<compile_context>
chip_gen: v7x
topology: tpu7x:2x2x1
jax: 0.10.0
libtpu: 0.0.40
codegen_flags: <defaults>
</compile_context>

<pallas_src>
import functools

import jax
import jax.numpy as jnp
import numpy as np
from jax import lax
from jax.experimental import pallas as pl
from jax.experimental.pallas import tpu as pltpu


def _round_up(x, m):
    return ((x + m - 1) // m) * m


def _sepconv_banded_kernel(x_ref, w_ref, o_ref, *, th, dilation, kh_taps):
    """One (batch n, output-lane tile j, output-row tile h) grid step.

    x_ref : (Hp_total, Kp)   whole padded image of batch n; lanes = Wp*C, zero-padded to Kp
    w_ref : (KH, Kp, TN)     banded fused depthwise+pointwise weights, lane tile j
    o_ref : (TH, TN)         lane-dense output tile (full vst stores, no masking)
    """
    h0 = pl.multiple_of(pl.program_id(2) * th, th)

    # f32 accumulation held in vregs: TH*TN <= 128*256 -> <= 32 vregs, no spill.
    acc = jnp.zeros(o_ref.shape, jnp.float32)
    for kh in range(kh_taps):  # short static loop, unrolled; LLO interleaves the MXU pushes
        # In-bounds by construction: h0 + kh*dilation + th <= Hp_total (asserted in wrapper).
        # (kh*dilation breaks 8-sublane alignment for kh>0 — acceptable at these sizes; a
        #  single (TH + (KH-1)*dil)-row load + XLU sublane shifts would remove the re-reads.)
        rows = x_ref[pl.ds(h0 + kh * dilation, th), :]                # (TH, Kp) row strip
        acc = acc + jnp.dot(rows, w_ref[kh],
                            preferred_element_type=jnp.float32)       # MXU, f32 accumulate
    o_ref[...] = acc.astype(o_ref.dtype)


def build_banded_weights(dw_w, pw_w, *, Wp, W_out, dilation, Kp, Np, compute_dtype):
    """Fold depthwise taps + pointwise mix into one banded matrix per kh row-tap.

      A[kh, w*C + c, wo*Cout + co] = sum_kw 1[w == wo + kw*dilation] * dw[c,0,kh,kw] * pw[co,c]

    Built once per weight update (hoist out of the per-step forward).  No dense
    (KH,KW,Wp,C,W_out,Cout) intermediate: the kw selection is contracted by one einsum.
    """
    C, _, KH, KW = dw_w.shape
    Cout = pw_w.shape[0]

    d = dw_w[:, 0, :, :].astype(jnp.float32)                          # (C, KH, KW)
    p = jnp.transpose(pw_w[:, :, 0, 0], (1, 0)).astype(jnp.float32)   # (C, Cout)
    taps = jnp.einsum("ckl,co->klco", d, p)                           # (KH, KW, C, Cout)

    wi = jnp.arange(Wp)
    wo = jnp.arange(W_out)
    kw = jnp.arange(KW)
    # band[kw, w, wo] = 1 iff input column w feeds output column wo through tap kw
    band = (wi[None, :, None] == wo[None, None, :] + kw[:, None, None] * dilation)
    band = band.astype(jnp.float32)                                   # (KW, Wp, W_out)

    # Contract kw directly: (KH, Wp, C, W_out, Cout), exact in f32.
    A = jnp.einsum("lpw,klco->kpcwo", band, taps)
    A = A.reshape(KH, Wp * C, W_out * Cout)
    # Zero-pad K and N to the lane-aligned kernel shapes (zeros contribute nothing).
    A = jnp.pad(A, ((0, 0), (0, Kp - Wp * C), (0, Np - W_out * Cout)))
    return A.astype(compute_dtype)


def separable_conv2d(x_nchw, dw_w, pw_w, *, stride=1, padding=0, dilation=1,
                     compute_dtype=jnp.bfloat16):
    """SeparableConv2d forward.

    x_nchw : (N, C, H, W)     input, NCHW (PyTorch convention)
    dw_w   : (C, 1, KH, KW)   depthwise conv weight (groups=C, bias=False)
    pw_w   : (Cout, C, 1, 1)  pointwise conv weight (1x1, bias=False)
    compute_dtype : MXU operand dtype (bf16 default; f32 for bit-exact results)
    returns: (N, Cout, H_out, W_out) in x's dtype (accumulation is always f32)
    """
    assert stride == 1, "only stride=1 supported in this Pallas kernel"  # TODO(synk)

    N, C, H, W = x_nchw.shape
    Cout = pw_w.shape[0]
    KH, KW = dw_w.shape[2], dw_w.shape[3]

    H_out = H + 2 * padding - dilation * (KH - 1)
    W_out = W + 2 * padding - dilation * (KW - 1)
    Hp = H + 2 * padding
    Wp = W + 2 * padding
    assert H_out > 0 and W_out > 0
    out_dtype = x_nchw.dtype
    itemsize_c = jnp.dtype(compute_dtype).itemsize
    itemsize_o = jnp.dtype(out_dtype).itemsize

    # ---- tile sizes (feed the MXU: large M, 128/256-aligned K and N) -------------
    row_align = 16 if itemsize_c == 2 else 8
    TH = min(128, _round_up(H_out, row_align))          # matmul M per grid step
    H_pad_out = _round_up(H_out, TH)                    # ragged rows -> pad, never OOB
    Hp_total = H_pad_out + dilation * (KH - 1)          # padded-input rows we must hold
    Kp = _round_up(Wp * C, 128)                         # contraction lanes (full vregs)
    Np = _round_up(W_out * Cout, 128)                   # output lanes (lane-dense stores)
    TN = 256 if (Np % 256 == 0) else 128                # 256 feeds v6e/v7x MXU width

    # every in-kernel row slice is inside the block:
    assert (H_pad_out // TH - 1) * TH + dilation * (KH - 1) + TH <= Hp_total

    banded_bytes = KH * Kp * Np * itemsize_c
    if banded_bytes > 32 * 2 ** 20:
        # TODO(synk): per-tap channel-tiled (C, Cout) matmul path for large C*W.
        raise NotImplementedError("banded fused weight too large for VMEM; "
                                  "small-C path only (see TODO above)")

    # ---- glue: layout + padding in plain JAX (wrapper-side) ----------------------
    x_nhwc = jnp.transpose(x_nchw, (0, 2, 3, 1))                       # (N, H, W, C)
    x_pad = jnp.pad(x_nhwc, ((0, 0),
                             (padding, padding + (H_pad_out - H_out)),  # conv pad + ragged rows
                             (padding, padding),
                             (0, 0)))
    x_flat = x_pad.reshape(N, Hp_total, Wp * C)                        # lanes = Wp*C
    x_flat = jnp.pad(x_flat, ((0, 0), (0, 0), (0, Kp - Wp * C)))       # lane-align K
    x_flat = x_flat.astype(compute_dtype)

    # Fused banded weights (build once per weight update; hoist in real training loops).
    A = build_banded_weights(dw_w, pw_w, Wp=Wp, W_out=W_out, dilation=dilation,
                             Kp=Kp, Np=Np, compute_dtype=compute_dtype)

    # ---- VMEM budget (double-buffered blocks), v7x-safe cap ----------------------
    vmem_est = 2 * (Hp_total * Kp * itemsize_c          # padded image block
                    + KH * Kp * TN * itemsize_c          # fused weight tile
                    + TH * TN * itemsize_o)              # output tile
    vmem_limit = int(min(48 * 2 ** 20, max(16 * 2 ** 20, 4 * vmem_est)))

    kernel = functools.partial(_sepconv_banded_kernel, th=TH, dilation=dilation, kh_taps=KH)

    out_flat = pl.pallas_call(
        kernel,
        out_shape=jax.ShapeDtypeStruct((N, H_pad_out, Np), out_dtype),
        grid_spec=pltpu.PrefetchScalarGridSpec(
            num_scalar_prefetch=0,
            # row-tile axis innermost: the image block (changes with n) and the weight
            # tile (changes with j) keep the same block index across it -> no re-DMA.
            grid=(N, Np // TN, H_pad_out // TH),
            in_specs=[
                # full padded image per batch element, revisited across j/h.
                pl.BlockSpec((None, Hp_total, Kp), lambda n, j, h: (n, 0, 0)),
                # fused banded weights, tiled along output lanes.
                pl.BlockSpec((KH, Kp, TN), lambda n, j, h: (0, 0, j)),
            ],
            # lane-dense output tile (TN = 128/256 lanes -> unmasked vst).
            out_specs=pl.BlockSpec((None, TH, TN), lambda n, j, h: (n, h, j)),
        ),
        compiler_params=pltpu.CompilerParams(
            dimension_semantics=("parallel", "parallel", "parallel"),
            vmem_limit_bytes=vmem_limit,
        ),
    )(x_flat, A)

    out = out_flat[:, :H_out, :W_out * Cout]                           # drop row/lane padding
    out = out.reshape(N, H_out, W_out, Cout)                           # wrapper-side reshape
    return jnp.transpose(out, (0, 3, 1, 2))                            # back to NCHW


def _reference(x_nchw, dw_w, pw_w, *, stride=1, padding=0, dilation=1):
    """Pure-JAX reference (lax conv), mirrors PyTorch semantics."""
    C = x_nchw.shape[1]
    y = lax.conv_general_dilated(
        x_nchw, dw_w,
        window_strides=(stride, stride),
        padding=((padding, padding), (padding, padding)),
        rhs_dilation=(dilation, dilation),
        dimension_numbers=("NCHW", "OIHW", "NCHW"),
        feature_group_count=C,
        precision=lax.Precision.HIGHEST,
    )
    y = lax.conv_general_dilated(
        y, pw_w,
        window_strides=(1, 1),
        padding=((0, 0), (0, 0)),
        dimension_numbers=("NCHW", "OIHW", "NCHW"),
        precision=lax.Precision.HIGHEST,
    )
    return y


if __name__ == "__main__":
    # SeparableConv2d(in_channels=4, out_channels=8, kernel_size=3, stride=1,
    #                 padding=1, dilation=1, bias=False) — Xception-style usage.
    N, C, H, W = 2, 4, 16, 16
    Cout, K, stride, padding, dilation = 8, 3, 1, 1, 1

    key = jax.random.PRNGKey(0)
    kx, kdw, kpw = jax.random.split(key, 3)

    x = jax.random.normal(kx, (N, C, H, W), dtype=jnp.float32)
    dw_bound = 1.0 / np.sqrt(K * K)          # depthwise: fan_in = 1*K*K
    pw_bound = 1.0 / np.sqrt(C)              # pointwise: fan_in = C*1*1
    dw_w = jax.random.uniform(kdw, (C, 1, K, K), jnp.float32, -dw_bound, dw_bound)
    pw_w = jax.random.uniform(kpw, (Cout, C, 1, 1), jnp.float32, -pw_bound, pw_bound)

    ref = _reference(x, dw_w, pw_w, stride=stride, padding=padding, dilation=dilation)

    # Exact path: f32 operands, tight tolerance.
    out_exact = separable_conv2d(x, dw_w, pw_w, stride=stride, padding=padding,
                                 dilation=dilation, compute_dtype=jnp.float32)
    out_exact = jax.block_until_ready(out_exact)
    np.testing.assert_allclose(np.asarray(out_exact), np.asarray(ref), rtol=1e-4, atol=1e-5)

    # Fast path (default): bf16 MXU operands, f32 accumulation -> looser tolerance
    # (operand rounding happens before the kw/c summation).
    out_fast = separable_conv2d(x, dw_w, pw_w, stride=stride, padding=padding,
                                dilation=dilation)
    out_fast = jax.block_until_ready(out_fast)
    np.testing.assert_allclose(np.asarray(out_fast), np.asarray(ref), rtol=2e-2, atol=2e-2)

    print("KERNEL_OK")
</pallas_src>

<mosaic_0001>
module attributes {stable_mosaic.version = 11 : i64} {
  func.func @_sepconv_banded_kernel(%arg0: i32, %arg1: i32, %arg2: i32, %arg3: memref<1x18x128xf32, #tpu.memory_space<vmem>>, %arg4: memref<3x128x128xf32, #tpu.memory_space<vmem>>, %arg5: memref<1x16x128xf32, #tpu.memory_space<vmem>>) attributes {dimension_semantics = [#tpu.dimension_semantics<parallel>, #tpu.dimension_semantics<parallel>, #tpu.dimension_semantics<parallel>], iteration_bounds = array<i64: 2, 1, 1>, scalar_prefetch = 0 : i64, scratch_operands = 0 : i64, tpu.core_type = #tpu.core_type<tc>, window_params = [{transform_indices = @transform_0, window_bounds = array<i64: 1, 18, 128>}, {transform_indices = @transform_1, window_bounds = array<i64: 3, 128, 128>}, {transform_indices = @transform_2, window_bounds = array<i64: 1, 16, 128>}]} {
    %c16_i32 = arith.constant 16 : i32
    %0 = arith.muli %arg2, %c16_i32 : i32
    %1 = tpu.assume_multiple %0, 16 : i32
    %cst = arith.constant 0.000000e+00 : f32
    %2 = vector.broadcast %cst : f32 to vector<16x128xf32>
    %c0_i32 = arith.constant 0 : i32
    %3 = arith.addi %1, %c0_i32 : i32
    %c0 = arith.constant 0 : index
    %4 = arith.index_cast %3 : i32 to index
    %c0_0 = arith.constant 0 : index
    %5 = vector.load %arg3[%c0, %4, %c0_0] : memref<1x18x128xf32, #tpu.memory_space<vmem>>, vector<1x16x128xf32>
    %6 = vector.shape_cast %5 : vector<1x16x128xf32> to vector<16x128xf32>
    %c0_1 = arith.constant 0 : index
    %c0_2 = arith.constant 0 : index
    %c0_3 = arith.constant 0 : index
    %7 = vector.load %arg4[%c0_1, %c0_2, %c0_3] : memref<3x128x128xf32, #tpu.memory_space<vmem>>, vector<1x128x128xf32>
    %8 = vector.shape_cast %7 : vector<1x128x128xf32> to vector<128x128xf32>
    %cst_4 = arith.constant dense<0.000000e+00> : vector<16x128xf32>
    %9 = tpu.matmul %6, %8, %cst_4 {dimension_numbers = #tpu.dot_dimension_numbers<[1], [0], [0], [1], [0, 0, 1, 1], [], []>} : vector<16x128xf32>, vector<128x128xf32>, vector<16x128xf32> -> vector<16x128xf32>
    %10 = arith.addf %2, %9 : vector<16x128xf32>
    %c1_i32 = arith.constant 1 : i32
    %11 = arith.addi %1, %c1_i32 : i32
    %c0_5 = arith.constant 0 : index
    %12 = arith.index_cast %11 : i32 to index
    %c0_6 = arith.constant 0 : index
    %13 = vector.load %arg3[%c0_5, %12, %c0_6] : memref<1x18x128xf32, #tpu.memory_space<vmem>>, vector<1x16x128xf32>
    %14 = vector.shape_cast %13 : vector<1x16x128xf32> to vector<16x128xf32>
    %c1 = arith.constant 1 : index
    %c0_7 = arith.constant 0 : index
    %c0_8 = arith.constant 0 : index
    %15 = vector.load %arg4[%c1, %c0_7, %c0_8] : memref<3x128x128xf32, #tpu.memory_space<vmem>>, vector<1x128x128xf32>
    %16 = vector.shape_cast %15 : vector<1x128x128xf32> to vector<128x128xf32>
    %cst_9 = arith.constant dense<0.000000e+00> : vector<16x128xf32>
    %17 = tpu.matmul %14, %16, %cst_9 {dimension_numbers = #tpu.dot_dimension_numbers<[1], [0], [0], [1], [0, 0, 1, 1], [], []>} : vector<16x128xf32>, vector<128x128xf32>, vector<16x128xf32> -> vector<16x128xf32>
    %18 = arith.addf %10, %17 : vector<16x128xf32>
    %c2_i32 = arith.constant 2 : i32
    %19 = arith.addi %1, %c2_i32 : i32
    %c0_10 = arith.constant 0 : index
    %20 = arith.index_cast %19 : i32 to index
    %c0_11 = arith.constant 0 : index
    %21 = vector.load %arg3[%c0_10, %20, %c0_11] : memref<1x18x128xf32, #tpu.memory_space<vmem>>, vector<1x16x128xf32>
    %22 = vector.shape_cast %21 : vector<1x16x128xf32> to vector<16x128xf32>
    %c2 = arith.constant 2 : index
    %c0_12 = arith.constant 0 : index
    %c0_13 = arith.constant 0 : index
    %23 = vector.load %arg4[%c2, %c0_12, %c0_13] : memref<3x128x128xf32, #tpu.memory_space<vmem>>, vector<1x128x128xf32>
    %24 = vector.shape_cast %23 : vector<1x128x128xf32> to vector<128x128xf32>
    %cst_14 = arith.constant dense<0.000000e+00> : vector<16x128xf32>
    %25 = tpu.matmul %22, %24, %cst_14 {dimension_numbers = #tpu.dot_dimension_numbers<[1], [0], [0], [1], [0, 0, 1, 1], [], []>} : vector<16x128xf32>, vector<128x128xf32>, vector<16x128xf32> -> vector<16x128xf32>
    %26 = arith.addf %18, %25 : vector<16x128xf32>
    %c0_15 = arith.constant 0 : index
    %c0_16 = arith.constant 0 : index
    %c0_17 = arith.constant 0 : index
    %27 = vector.load %arg5[%c0_15, %c0_16, %c0_17] : memref<1x16x128xf32, #tpu.memory_space<vmem>>, vector<1x16x128xf32>
    %28 = vector.shape_cast %27 : vector<1x16x128xf32> to vector<16x128xf32>
    %29 = vector.shape_cast %26 : vector<16x128xf32> to vector<1x16x128xf32>
    tpu.vector_store %arg5[%c0_15, %c0_16, %c0_17], %29 {strides = array<i32>} : memref<1x16x128xf32, #tpu.memory_space<vmem>>, vector<1x16x128xf32>,
    return
  }
  func.func @transform_0(%arg0: i32, %arg1: i32, %arg2: i32) -> (i32, i32, i32) {
    %c0_i32 = arith.constant 0 : i32
    %c0_i32_0 = arith.constant 0 : i32
    %c0_i32_1 = arith.constant 0 : i32
    return %arg0, %c0_i32, %c0_i32_0 : i32, i32, i32
  }
  func.func @transform_1(%arg0: i32, %arg1: i32, %arg2: i32) -> (i32, i32, i32) {
    %c0_i32 = arith.constant 0 : i32
    %c0_i32_0 = arith.constant 0 : i32
    %c0_i32_1 = arith.constant 0 : i32
    return %c0_i32, %c0_i32_0, %arg1 : i32, i32, i32
  }
  func.func @transform_2(%arg0: i32, %arg1: i32, %arg2: i32) -> (i32, i32, i32) {
    %c0_i32 = arith.constant 0 : i32
    return %arg0, %arg2, %arg1 : i32, i32, i32
  }
}

</mosaic_0001>

<bundles_post_ra>
// kernel: tpu_custom_call.1
= control target key start
LH: loop header
LB: loop body
LE: loop exit
PB: predicated region body
PF: predicated region fallthrough
CT: control target
= control target key end

     0   :  { %7 = vsyncpa [#allocation3], 0  ;;  %s1238_s0 = inlined_call_operand.vmem [shape: f32[2,18,128], index: 0, kind: input, shape index: {}]   ;;  %s1239_s1 = inlined_call_operand.hbm [shape: f32[3,128,128], index: 1, kind: input, shape index: {}]   ;;  %s1240_s2 = inlined_call_operand.hbm [shape: f32[2,16,128], index: 2, kind: output, shape index: {}]  }
   0x1   :  { %8 = vsyncpa [#allocation4], 0 }
   0x2   :  { %10 = vsyncpa [#allocation4 + $0x1], 0  ;;  %s1077_s9 = smov 0   ;;  %s1079_s10 = smov 0  }
   0x3   :  { %s1081_s11 = smov 0   ;;  %s1083_s12 = smov 0  }
   0x4   :  { %s1085_s13 = smov 0   ;;  %s1087_s14 = smov 0  }
   0x5 LB: > { %s595_s15 = sadd.s32 4294967295, %s1054_s14   ;;  %s596_s16 = sadd.s32 4294967294, %s1054_s14   ;;  %s1054_s14 = sphi %s1087_s14, %s16_s14   ;;  %s1050_s13 = sphi %s1085_s13, %s1258_s13   ;;  %s1046_s12 = sphi %s1083_s12, %s1257_s12   ;;  %s1042_s11 = sphi %s1081_s11, %s1256_s11   ;;  %s1038_s10 = sphi %s1079_s10, %s1255_s10   ;;  %s1034_s9 = sphi %s1077_s9, %s1254_s9  }
   0x6   : > { %s35_s17 = sadd.s32 1, %s1050_s13  ;;  %s98_s18 = sadd.s32 1, %s1042_s11 }
   0x7   : > { %p37_p0 = scmp.ge.s32.totalorder %s35_s17, 2  ;;  %p108_p1 = scmp.ne.s32.totalorder %s1042_s11, %s1038_s10 }
   0x8   : > { %p109_p2 = scmp.eq.s32.totalorder %s595_s15, 1  ;;  %p114_p3 = scmp.ne.s32.totalorder %s1038_s10, %s1034_s9 }
   0x9   : > { %s1260_s17 = smov (%p37_p0, %s35_s17), 0  ;;  %p115_p5 = scmp.eq.s32.totalorder %s596_s16, 1 }
   0xa   : > { %p1117_p4 = por %p109_p2, %p108_p1  ;;  %s91_s20 = ssub.s32 %s1050_s13, %s1260_s17 }
   0xb   : > { %p597_p6 = scmp.ge.s32.totalorder %s1054_s14, 1  ;;  %p96_p7 = scmp.eq.s32.totalorder %s91_s20, 0 }
   0xc   : > { %s1245_s19 = scalar_select %p1117_p4, 1, 0 }
   0xd   : > { %p1124_p8 = por %p115_p5, %p114_p3  ;;  %p122_p9 = scmp.lt.s32.totalorder %s1054_s14, 3 }
   0xe   : > { %s1130_s22 = scalar_select %p96_p7, %s1042_s11, %s98_s18  }
   0xf   : > { %s1246_s21 = scalar_select %p1124_p8, 1, 0 }
  0x10   : > { %p1132_p10 = pnand %p597_p6, %p122_p9  ;;  %p1136_p11 = scmp.eq.s32.totalorder %s595_s15, 0 }
  0x11   : > { %s1056_s25 = smov [#allocation2]   ;;  %s944_s30 = scalar_lea.hbm %s1239_s1, 6144 }
  0x12   : > { %s1247_s23 = scalar_select %p1132_p10, 1, 0 }
  0x13   : > { %s1248_s24 = scalar_select %p1136_p11, 1, 0 }
  0x14   : > { %p880_p12 = pneg %p1132_p10  ;;  %s136_s26 = sshll.u32 %s1056_s25, 4  ;;  %s137_s26 = int_to_ptr.vmem [resolvable:$true] %s136_s26 }
  0x15   : > { %p945_p0 = scmp.ne.s32.totalorder %s1239_s1, %s944_s30  ;;  %p951_p5 = scmp.lt.u32.totalorder %s944_s30, %s1239_s1 }
  0x16   : > { %p1144_p13 = pnand %p1136_p11, %p880_p12 }
  0x18   : > { %p946_p1 = pneg %p1144_p13 }
  0x1a   : > { %p947_p2 = pnand %p946_p1, %p945_p0 }
  0x1c   : > { %p948_p3 = pneg %p947_p2 }
  0x1e   : > { %p953_p6 = pnand %p951_p5, %p948_p3 }
  0x20   : > { %956 = shalt.err (!%p953_p6)
}
  0x21   : > { %s957_s7 = scalar_lea.vmem %s137_s26, 6144  ;;  %p965_p8 = scmp.lt.s32.totalorder %s137_s26, %s137_s26 }
  0x22   : > { %p958_p7 = scmp.ne.s32.totalorder %s137_s26, %s957_s7  ;;  %p966_p4 = scmp.lt.s32.totalorder %s957_s7, %s957_s7 }
  0x24   : > { %p960_p9 = pnand %p958_p7, %p946_p1  ;;  %p967_p11 = por %p966_p4, %p965_p8 }
  0x26   : > { %p961_p12 = pneg %p960_p9 }
  0x28   : > { %p968_p10 = pnand %p967_p11, %p961_p12 }
  0x2a   : > { %971 = shalt.err (!%p968_p10)
}
  0x2b   : > { %s1057_s8 = smov 128   ;;  %s1058_s15 = smov 8  }
  0x2c   : > { %883 = dma.hbm_to_vmem [thread:$0]  (!%p1144_p13), %s1239_s1, 6144, %s137_s26, [#allocation3], %s1057_s8, %s1057_s8, %s1058_s15  }
  0x2d   : > { %p1250_p0 = scmp.ne.s32.totalorder %s1247_s23, 0 }
  0x2e   : > { %p1251_p2 = scmp.ne.s32.totalorder (!%p1250_p0), %s1248_s24, 0 }
  0x2f   : > { %160 = sbr.rel (%p1250_p0) target bundleno = 352 (0x160), region = 28 }
  0x36   : > { %1025 = dma.done.wait (%p1251_p2), [#allocation3], 6144  }
  0x37   : > { %1027 = vsyncadd (%p1251_p2), [#allocation3], 4294961152  ;;  %p182_p4 = scmp.lt.s32.totalorder %s1046_s12, 1  ;;  %v192_v0 = vld [vmem:[#allocation2] sm:$0xff]  ;;  %v193_v1 = vld [vmem:[#allocation2 + $0x8] sm:$0xff]  ;;  %s179_s24 = sand.u32 1, %s1038_s10  }
  0x38   : > { %v194_v2 = vld [vmem:[#allocation2 + $0x10] sm:$0xff]  ;;  %v805_v3 = vpack.c.bf16 %v193_v1, %v192_v0  ;;  %v195_v4 = vld [vmem:[#allocation2 + $0x18] sm:$0xff]  ;;  %v196_v6 = vld [vmem:[#allocation2 + $0x20] sm:$0xff]  ;;  %s602_s28 = sshll.u32 %s179_s24, 4  ;;  %s613_s3 = sshll.u32 %s1046_s12, 8 }
  0x39   : > { %s183_s20 = scalar_select %p182_p4, %s1046_s12, 1  ;;  %v809_v5 = vpack.c.bf16 %v195_v4, %v194_v2  ;;  %v197_v7 = vld [vmem:[#allocation2 + $0x28] sm:$0xff]  ;;  %v213_v9 = vld [vmem:[#allocation2 + $0x80] sm:$0xff]  ;;  %v198_v11 = vld [vmem:[#allocation2 + $0x30] sm:$0xff] }
  0x3a   : > { %806 = vmatprep.subr.bf16.mxu0 %v805_v3  ;;  %v813_v8 = vpack.c.bf16 %v197_v7, %v196_v6  ;;  %v214_v10 = vld [vmem:[#allocation2 + $0x88] sm:$0xff]  ;;  %v199_v12 = vld [vmem:[#allocation2 + $0x38] sm:$0xff]  ;;  %v215_v15 = vld [vmem:[#allocation2 + $0x90] sm:$0xff]  ;;  %s181_s29 = scalar_lea.vmem [#allocation5], %s602_s28  ;;  %s1190_s6 = scalar_lea.hbm %s1240_s2, %s613_s3 }
  0x3b   : > { %s873_s25 = smul.u32 24, %s183_s20  ;;  %808 = vmatpush3.bf16.msra.mxu0 %v805_v3  ;;  %v773_v13 = vpack.c.bf16 %v214_v10, %v213_v9  ;;  %v216_v16 = vld [vmem:[#allocation2 + $0x98] sm:$0xff]  ;;  %v217_v18 = vld [vmem:[#allocation2 + $0xa0] sm:$0xff]  ;;  %v817_v19 = vpack.c.bf16 %v199_v12, %v198_v11  ;;  %v218_v20 = vld [vmem:[#allocation2 + $0xa8] sm:$0xff]  ;;  %s496_s30 = sshll.u32 %s181_s29, 4  ;;  %s1185_s30 = int_to_ptr.vmem [resolvable:$true] %s496_s30 }
  0x3c   : > { %810 = vmatprep.subr.bf16.mxu0 %v809_v5  ;;  %v777_v17 = vpack.c.bf16 %v216_v16, %v215_v15  ;;  %v200_v21 = vld [vmem:[#allocation2 + $0x40] sm:$0xff]  ;;  %v201_v22 = vld [vmem:[#allocation2 + $0x48] sm:$0xff]  ;;  %v781_v23 = vpack.c.bf16 %v218_v20, %v217_v18  ;;  %v219_v24 = vld [vmem:[#allocation2 + $0xb0] sm:$0xff]  ;;  %s1192_s7 = scalar_lea.sflag [#allocation4], %s179_s24  ;;  %s972_s8 = scalar_lea.vmem %s1185_s30, 256 }
  0x3d   : > { %s1175_s27 = scalar_lea.vmem %s1238_s0, %s873_s25  ;;  %774 = vmatprep.subr.bf16.mxu1 %v773_v13  ;;  %v220_v25 = vld [vmem:[#allocation2 + $0xb8] sm:$0xff]  ;;  %v821_v26 = vpack.c.bf16 %v201_v22, %v200_v21  ;;  %v202_v27 = vld [vmem:[#allocation2 + $0x50] sm:$0xff]  ;;  %v221_v30 = vld [vmem:[#allocation2 + $0xc0] sm:$0xff]  ;;  %p973_p8 = scmp.ne.s32.totalorder %s1185_s30, %s972_s8 }
  0x3e   : > { %v190_v14 = vld [vmem:[%s1175_s27] sm:$0xff]  ;;  %776 = vmatpush3.bf16.msra.mxu1 %v773_v13  ;;  %v203_v28 = vld [vmem:[#allocation2 + $0x58] sm:$0xff]  ;;  %v785_v29 = vpack.c.bf16 %v220_v25, %v219_v24  ;;  %v222_v31 = vld [vmem:[#allocation2 + $0xc8] sm:$0xff]  ;;  %p1252_p10 = scmp.ne.s32.totalorder %s1245_s19, 0  ;;  %s1059_s12 = smov [#allocation5]  }
  0x3f   : > { %735 = vmatprep.mubr.f32.mxu0 %v190_v14  ;;  %812 = vmatpush3.bf16.msra.mxu0 %v809_v5  ;;  %v604_v32 = vld [vmem:[%s1175_s27 + $0x1] sm:$0xff]  ;;  %v825_v33 = vpack.c.bf16 %v203_v28, %v202_v27  ;;  %v789_v36 = vpack.c.bf16 %v222_v31, %v221_v30  ;;  %v223_v37 = vld [vmem:[#allocation2 + $0xd0] sm:$0xff]  ;;  %v224_v38 = vld [vmem:[#allocation2 + $0xd8] sm:$0xff]  ;;  %s976_s15 = sshll.u32 %s1059_s12, 4  ;;  %s977_s15 = int_to_ptr.vmem [resolvable:$false] %s976_s15 }
  0x40   : > { %814 = vmatprep.subr.bf16.mxu0 %v813_v8  ;;  %778 = vmatprep.subr.bf16.mxu1 %v777_v17  ;;  %v204_v34 = vld [vmem:[#allocation2 + $0x60] sm:$0xff]  ;;  %v205_v35 = vld [vmem:[#allocation2 + $0x68] sm:$0xff]  ;;  %v206_v40 = vld [vmem:[#allocation2 + $0x70] sm:$0xff]  ;;  %v793_v42 = vpack.c.bf16 %v224_v38, %v223_v37  ;;  %p974_p11 = pnand %p973_p8, %p1252_p10  ;;  %s978_s16 = scalar_lea.vmem %s977_s15, 512 }
  0x41   : > { %700 = vmatprep.mubr.f32.mxu1 %v604_v32  ;;  %v829_v39 = vpack.c.bf16 %v205_v35, %v204_v34  ;;  %v207_v41 = vld [vmem:[#allocation2 + $0x78] sm:$0xff]  ;;  %v225_v43 = vld [vmem:[#allocation2 + $0xe0] sm:$0xff]  ;;  %v226_v44 = vld [vmem:[#allocation2 + $0xe8] sm:$0xff]  ;;  %p979_p1 = scmp.lt.s32.totalorder %s1185_s30, %s977_s15  ;;  %p980_p3 = scmp.lt.s32.totalorder %s978_s16, %s972_s8 }
  0x42   : > { %780 = vmatpush3.bf16.msra.mxu1 %v777_v17  ;;  %v833_v45 = vpack.c.bf16 %v207_v41, %v206_v40  ;;  %v384_v46 = vld [vmem:[#allocation2 + $0x100] sm:$0xff]  ;;  %v385_v47 = vld [vmem:[#allocation2 + $0x108] sm:$0xff]  ;;  %v797_v48 = vpack.c.bf16 %v226_v44, %v225_v43  ;;  %v227_v49 = vld [vmem:[#allocation2 + $0xf0] sm:$0xff]  ;;  %p975_p13 = pneg %p974_p11 }
  0x43   : > { %816 = vmatpush3.bf16.msra.mxu0 %v813_v8  ;;  %782 = vmatprep.subr.bf16.mxu1 %v781_v23  ;;  %v228_v50 = vld [vmem:[#allocation2 + $0xf8] sm:$0xff]  ;;  %v837_v51 = vpack.c.bf16 %v385_v47, %v384_v46  ;;  %v386_v52 = vld [vmem:[#allocation2 + $0x110] sm:$0xff]  ;;  %v191_v55 = vld [vmem:[%s1175_s27 + $0x8] sm:$0xff]  ;;  %p981_p5 = por %p980_p3, %p979_p1 }
  0x44   : > { %818 = vmatprep.subr.bf16.mxu0 %v817_v19  ;;  %v387_v53 = vld [vmem:[#allocation2 + $0x118] sm:$0xff]  ;;  %v801_v54 = vpack.c.bf16 %v228_v50, %v227_v49  ;;  %v606_v57 = vld [vmem:[%s1175_s27 + $0x2] sm:$0xff]  ;;  %v390_v62 = vld [vmem:[#allocation2 + $0x130] sm:$0xff] }
  0x45   : > { %v841_v56 = vpack.c.bf16 %v387_v53, %v386_v52  ;;  %v388_v58 = vld [vmem:[#allocation2 + $0x120] sm:$0xff]  ;;  %v389_v59 = vld [vmem:[#allocation2 + $0x128] sm:$0xff]  ;;  %v391_v63 = vld [vmem:[#allocation2 + $0x138] sm:$0xff]  ;;  %p982_p6 = pnand %p981_p5, %p975_p13 }
  0x46   : > { %784 = vmatpush3.bf16.msra.mxu1 %v781_v23  ;;  %v845_v60 = vpack.c.bf16 %v389_v59, %v388_v58  ;;  %v605_v61 = vld [vmem:[%s1175_s27 + $0x9] sm:$0xff]  ;;  %v849_v0 = vpack.c.bf16 %v391_v63, %v390_v62  ;;  %v392_v1 = vld [vmem:[#allocation2 + $0x140] sm:$0xff]  ;;  %v395_v5 = vld [vmem:[#allocation2 + $0x158] sm:$0xff] }
  0x47   : > { %820 = vmatpush3.bf16.msra.mxu0 %v817_v19  ;;  %786 = vmatprep.subr.bf16.mxu1 %v785_v29  ;;  %v393_v2 = vld [vmem:[#allocation2 + $0x148] sm:$0xff]  ;;  %v394_v4 = vld [vmem:[#allocation2 + $0x150] sm:$0xff]  ;;  %v396_v7 = vld [vmem:[#allocation2 + $0x160] sm:$0xff] }
  0x48   : > { %822 = vmatprep.subr.bf16.mxu0 %v821_v26  ;;  %v853_v3 = vpack.c.bf16 %v393_v2, %v392_v1  ;;  %v857_v6 = vpack.c.bf16 %v395_v5, %v394_v4  ;;  %v397_v8 = vld [vmem:[#allocation2 + $0x168] sm:$0xff]  ;;  %v398_v10 = vld [vmem:[#allocation2 + $0x170] sm:$0xff]  ;;  %v399_v11 = vld [vmem:[#allocation2 + $0x178] sm:$0xff] }
  0x49   : > { %v861_v9 = vpack.c.bf16 %v397_v8, %v396_v7  ;;  %v865_v12 = vpack.c.bf16 %v399_v11, %v398_v10  ;;  %v607_v13 = vld [vmem:[%s1175_s27 + $0xa] sm:$0xff] }
  0x4a   : > { %788 = vmatpush3.bf16.msra.mxu1 %v785_v29 }
  0x4b   : > { %824 = vmatpush3.bf16.msra.mxu0 %v821_v26  ;;  %790 = vmatprep.subr.bf16.mxu1 %v789_v36 }
  0x4c   : > { %826 = vmatprep.subr.bf16.mxu0 %v825_v33 }
  0x4e   : > { %792 = vmatpush3.bf16.msra.mxu1 %v789_v36 }
  0x4f   : > { %828 = vmatpush3.bf16.msra.mxu0 %v825_v33  ;;  %794 = vmatprep.subr.bf16.mxu1 %v793_v42 }
  0x50   : > { %830 = vmatprep.subr.bf16.mxu0 %v829_v39 }
  0x52   : > { %796 = vmatpush3.bf16.msra.mxu1 %v793_v42 }
  0x53   : > { %832 = vmatpush3.bf16.msra.mxu0 %v829_v39  ;;  %798 = vmatprep.subr.bf16.mxu1 %v797_v48 }
  0x54   : > { %834 = vmatprep.subr.bf16.mxu0 %v833_v45 }
  0x56   : > { %800 = vmatpush3.bf16.msra.mxu1 %v797_v48 }
  0x57   : > { %836 = vmatpush3.bf16.msra.mxu0 %v833_v45  ;;  %802 = vmatprep.subr.bf16.mxu1 %v801_v54 }
  0x58   : > { %838 = vmatprep.subr.bf16.mxu0 %v837_v51 }
  0x5a   : > { %736 = vmatmul.mubr.f32.vlgmr.msra.gmra.mrb[0].mxu0 %v191_v55  ;;  %804 = vmatpush3.bf16.msra.mxu1 %v801_v54 }
  0x5b   : > { %840 = vmatpush3.bf16.msra.mxu0 %v837_v51  ;;  %770 = vmatprep.mubr.f32.mxu0 %v606_v57 }
  0x5c   : > { %842 = vmatprep.subr.bf16.mxu0 %v841_v56 }
  0x5d   : > { %701 = vmatmul.mubr.f32.vlgmr.msra.gmra.mrb[0].mxu1 %v605_v61 }
  0x5f   : > { %844 = vmatpush3.bf16.msra.mxu0 %v841_v56 }
  0x60   : > { %846 = vmatprep.subr.bf16.mxu0 %v845_v60 }
  0x63   : > { %848 = vmatpush3.bf16.msra.mxu0 %v845_v60 }
  0x64   : > { %850 = vmatprep.subr.bf16.mxu0 %v849_v0 }
  0x67   : > { %852 = vmatpush3.bf16.msra.mxu0 %v849_v0 }
  0x68   : > { %854 = vmatprep.subr.bf16.mxu0 %v853_v3 }
  0x6b   : > { %856 = vmatpush3.bf16.msra.mxu0 %v853_v3 }
  0x6c   : > { %858 = vmatprep.subr.bf16.mxu0 %v857_v6 }
  0x6f   : > { %860 = vmatpush3.bf16.msra.mxu0 %v857_v6 }
  0x70   : > { %862 = vmatprep.subr.bf16.mxu0 %v861_v9 }
  0x73   : > { %864 = vmatpush3.bf16.msra.mxu0 %v861_v9 }
  0x74   : > { %866 = vmatprep.subr.bf16.mxu0 %v865_v12 }
  0x77   : > { %868 = vmatpush3.bf16.msra.mxu0 %v865_v12 }
  0x7a   : > { %771 = vmatmul.mubr.f32.vlgmr.msra.gmra.mrb[0].mxu0 %v607_v13 }
 0x130   : > { %v702_v14 = vpop.f32.mrb[0].mxu1 }
 0x131   : > { %v295_v15 = vpop.f32.mrb[1].mxu1 }
 0x14d   : > { %v772_v16 = vpop.f32.mrb[0].mxu0 }
 0x14e   : > { %v869_v17 = vadd.f32 %v772_v16, %v702_v14  ;;  %v466_v18 = vpop.f32.mrb[1].mxu0 }
 0x14f   : > { %v870_v19 = vadd.f32 %v466_v18, %v295_v15 }
 0x150   : > { %478 = vst [vmem:[%s181_s29 + $0x8] sm:$0xff] %v869_v17 }
 0x151   : > { %477 = vst [vmem:[%s181_s29] sm:$0xff] %v870_v19 }
 0x152   : > { %985 = shalt.err (!%p982_p6)
}
 0x153   : > { %s986_s18 = scalar_lea.hbm %s1190_s6, 256  ;;  %s990_s23 = scalar_lea.hbm %s1240_s2, 512 }
 0x154   : > { %p987_p7 = scmp.ne.s32.totalorder %s1190_s6, %s986_s18  ;;  %p991_p0 = scmp.lt.u32.totalorder %s1190_s6, %s1240_s2 }
 0x155   : > { %p992_p2 = scmp.lt.u32.totalorder %s990_s23, %s986_s18  ;;  %p994_p8 = scmp.lt.u32.totalorder %s986_s18, %s1190_s6 }
 0x156   : > { %p988_p9 = pnand %p987_p7, %p1252_p10 }
 0x157   : > { %p993_p4 = por %p992_p2, %p991_p0 }
 0x158   : > { %p989_p12 = pneg %p988_p9 }
 0x159   : > { %p995_p11 = por %p994_p8, %p993_p4 }
 0x15b   : > { %p996_p13 = pnand %p995_p11, %p989_p12 }
 0x15d   : > { %999 = shalt.err (!%p996_p13)
}
 0x15e   : > { %s1060_s24 = smov 128   ;;  %s1061_s28 = smov 8  }
 0x15f   : > { %878 = dma.vmem_to_hbm [thread:$0]  (%p1252_p10), %s1185_s30, 256, %s1190_s6, %s1192_s7, %s1060_s24, %s1060_s24, %s1061_s28  }
 0x160 PF: > { %p890_p1 = scmp.ge.s32.totalorder %s1054_s14, 2  ;;  %s511_s29 = sand.u32 1, %s1034_s9  }
 0x161   : > { %p1253_p3 = scmp.ne.s32.totalorder %s1246_s21, 0  ;;  %s512_s3 = scalar_lea.sflag [#allocation4], %s511_s29 }
 0x163   : > { %p885_p5 = pnand %p890_p1, %p1253_p3 }
 0x165   : > { %1029 = dma.done.wait (!%p885_p5), %s512_s3, 256  }
 0x166   : > { %1031 = vsyncadd (!%p885_p5), %s512_s3, 4294967040  ;;  %s16_s14 = sadd.s32 1, %s1054_s14   ;;  %s1254_s9 = smov %s1038_s10 }
 0x167   : > { %p13_p6 = scmp.ge.s32.totalorder %s16_s14, 4   ;;  %s1255_s10 = smov %s1042_s11 }
 0x168   : > { %s1256_s11 = smov %s1130_s22  ;;  %s1257_s12 = smov %s1050_s13 }
 0x169   : > { %s1258_s13 = smov %s1260_s17  ;;  %15 = sbr.rel (!%p13_p6) target bundleno = 5 (0x5), region = 74 }
 0x170   :  { %517 = vsyncpa [#allocation3], 1 }
 0x171   :  { %519 = vsyncpa [#allocation3 + $0x1], 1 }
 0x172   :  { %520 = vsyncpa [#allocation4], 1 }
 0x173   :  { %522 = vsyncpa [#allocation4 + $0x1], 1 }

</bundles_post_ra>
